<compile_context>
chip_gen: v6e
topology: v6e:2x2x1
jax: 0.10.0
libtpu: 0.0.40
codegen_flags: <defaults>
</compile_context>

<pallas_src>
from typing import NamedTuple

import jax
import jax.numpy as jnp
from jax.experimental import pallas as pl
from jax.experimental.pallas import tpu as pltpu


def _round_up(v, m):
    return (v + m - 1) // m * m


def _vmem_budget_bytes():
    """Generation-aware VMEM budget: ~100 MiB on 128-MiB parts, ~56 MiB on v7x (64 MiB)."""
    try:
        kind = jax.devices()[0].device_kind.lower()
    except Exception:
        kind = ""
    if "v7" in kind:
        return 56 * 1024 * 1024
    if any(tag in kind for tag in ("v4", "v5", "v6")):
        return 100 * 1024 * 1024
    return 56 * 1024 * 1024  # conservative default for unknown parts


def _largest_divisor_leq(n, cap):
    cap = max(1, min(n, cap))
    for d in range(cap, 0, -1):
        if n % d == 0:
            return d
    return 1


class MLPParams(NamedTuple):
    w1_p: jax.Array   # (dim_p, hid_p) lane-padded, stored as (in, out)
    b1_p: jax.Array   # (1, hid_p)
    w2_p: jax.Array   # (hid_p, dim_p)
    b2_p: jax.Array   # (1, dim_p)
    dim: int          # logical feature dim
    hidden: int       # logical hidden dim


def prepare_mlp_params(w1, b1, w2, b2):
    """Pad weights to 128-lane multiples ONCE (hoisted out of the per-call forward path).

    Padded hidden units have b1 = 0 -> swish(0) = 0 -> contribute nothing to fc2;
    padded output columns are sliced off by the wrapper. Numerically inert.
    """
    dim, hidden = w1.shape
    assert w2.shape == (hidden, dim) and b1.shape == (hidden,) and b2.shape == (dim,)
    dim_p = _round_up(dim, 128)
    hid_p = _round_up(hidden, 128)
    if dim_p == dim and hid_p == hidden:
        return MLPParams(w1, b1.reshape(1, hidden), w2, b2.reshape(1, dim), dim, hidden)
    w1_p = jnp.zeros((dim_p, hid_p), w1.dtype).at[:dim, :hidden].set(w1)
    b1_p = jnp.zeros((1, hid_p), b1.dtype).at[0, :hidden].set(b1)
    w2_p = jnp.zeros((hid_p, dim_p), w2.dtype).at[:hidden, :dim].set(w2)
    b2_p = jnp.zeros((1, dim_p), b2.dtype).at[0, :dim].set(b2)
    return MLPParams(w1_p, b1_p, w2_p, b2_p, dim, hidden)


# ----------------------------------------------------------------------------- kernels
def _mlp_kernel_resident(x_ref, w1_ref, b1_ref, w2_ref, b2_ref, o_ref):
    """Weight-resident plan: whole hidden dim in one pass, no accumulator scratch."""
    h = jnp.dot(x_ref[...], w1_ref[...], preferred_element_type=jnp.float32)
    h = h + b1_ref[...].astype(jnp.float32)
    h = h * jax.nn.sigmoid(h)           # Swish; sigmoid -> EUP slot
    # Dropout(p=0.2) -> identity in eval mode.
    acc = jnp.dot(h.astype(w2_ref.dtype), w2_ref[...], preferred_element_type=jnp.float32)
    o_ref[...] = (acc + b2_ref[...].astype(jnp.float32)).astype(o_ref.dtype)


def _mlp_kernel_streamed(x_ref, w1_ref, b1_ref, w2_ref, b2_ref, o_ref, acc_ref):
    """Weight-streaming plan: grid axis 1 iterates hidden chunks (fc2 reduction)."""
    j = pl.program_id(1)

    @pl.when(j == 0)
    def _():
        acc_ref[...] = jnp.zeros_like(acc_ref)

    h = jnp.dot(x_ref[...], w1_ref[...], preferred_element_type=jnp.float32)
    h = h + b1_ref[...].astype(jnp.float32)
    h = h * jax.nn.sigmoid(h)
    # Dropout(p=0.2) -> identity in eval mode.
    # TODO(synk): training-mode dropout (stochastic masking via pltpu.prng_*) not implemented.
    acc_ref[...] += jnp.dot(h.astype(w2_ref.dtype), w2_ref[...],
                            preferred_element_type=jnp.float32)

    @pl.when(j == pl.num_programs(1) - 1)
    def _():
        o_ref[...] = (acc_ref[...] + b2_ref[...].astype(jnp.float32)).astype(o_ref.dtype)


# ----------------------------------------------------------------------------- wrapper
def _choose_row_tile(N, sub, target):
    # Enough row tiles that the last one isn't mostly padding; >= 2 tiles when possible
    # so the "parallel" row axis can split across both v7x TensorCores.
    min_tiles = 2 if N >= 2 * sub else 1
    n_tiles = max(min_tiles, -(-N // target))
    return _round_up(-(-N // n_tiles), sub)


def mlp_pallas(x, params: MLPParams, *, tile_n=None, tile_h=None, vmem_limit_bytes=None):
    """x: (N, dim) -> (N, dim). Fused 2-layer MLP with Swish (eval-mode dropout)."""
    N, dim = x.shape
    assert dim == params.dim, "feature dim mismatch"
    dim_p, hid_p = params.w1_p.shape
    dtype = x.dtype
    isz = jnp.dtype(dtype).itemsize
    wsz = jnp.dtype(params.w1_p.dtype).itemsize
    sub = 8 if isz >= 4 else 16
    hid_units = hid_p // 128

    budget = _vmem_budget_bytes() if vmem_limit_bytes is None else int(vmem_limit_bytes)

    def plan_bytes(tn, th, streaming):
        b = 2 * tn * dim_p * isz           # x tiles (double-buffered)
        b += 2 * tn * dim_p * isz          # out tiles
        b += 2 * dim_p * th * wsz          # W1 chunk
        b += 2 * th * dim_p * wsz          # W2 chunk
        b += 2 * (th + dim_p) * wsz        # biases
        if streaming:
            b += tn * dim_p * 4            # f32 accumulator scratch
        return b

    def pick_tn(target):
        t = tile_n if tile_n is not None else _choose_row_tile(N, sub, target)
        return _round_up(min(t, _round_up(N, sub)), sub)

    # Sanitize a user-supplied hidden tile: 128-aligned divisor of hid_p (no dead columns).
    if tile_h is not None:
        cap_units = max(1, _round_up(min(tile_h, hid_p), 128) // 128)
        th = 128 * _largest_divisor_leq(hid_units, cap_units)
    else:
        th = None

    resident_tn = pick_tn(256)
    use_resident = (th == hid_p) or (th is None and plan_bytes(resident_tn, hid_p, False) <= budget)

    if use_resident:
        tn, th = resident_tn, hid_p
    else:
        # Streaming regime: larger row tiles raise MACs per streamed weight byte
        # (v6e needs ~650 FLOP/byte; v5e/v7x are fine with less).
        tn = pick_tn(768 if isz < 4 else 512)
        if th is None:
            fixed = plan_bytes(tn, 0, True)
            per_unit = 4 * dim_p * 128 * wsz + 2 * 128 * wsz
            cap = max(1, (budget - fixed) // per_unit) if budget > fixed else 1
            th = 128 * _largest_divisor_leq(hid_units, cap)

    n_p = _round_up(N, tn)
    # Pad x only when actually needed (skip the wrapper copy for aligned shapes).
    if n_p == N and dim_p == dim:
        x_p = x
    else:
        x_p = jnp.zeros((n_p, dim_p), dtype).at[:N, :dim].set(x)

    n_tiles = n_p // tn
    cparams = pltpu.CompilerParams(
        dimension_semantics=("parallel",) if th == hid_p else ("parallel", "arbitrary"),
        vmem_limit_bytes=int(budget),
    )

    if th == hid_p:
        # Weight-resident: constant index maps -> W1/W2/b1/b2 DMA'd once for the whole grid.
        out_p = pl.pallas_call(
            _mlp_kernel_resident,
            out_shape=jax.ShapeDtypeStruct((n_p, dim_p), dtype),
            grid_spec=pltpu.PrefetchScalarGridSpec(
                num_scalar_prefetch=0,
                grid=(n_tiles,),
                in_specs=[
                    pl.BlockSpec((tn, dim_p), lambda i: (i, 0)),
                    pl.BlockSpec((dim_p, hid_p), lambda i: (0, 0)),
                    pl.BlockSpec((1, hid_p), lambda i: (0, 0)),
                    pl.BlockSpec((hid_p, dim_p), lambda i: (0, 0)),
                    pl.BlockSpec((1, dim_p), lambda i: (0, 0)),
                ],
                out_specs=pl.BlockSpec((tn, dim_p), lambda i: (i, 0)),
            ),
            compiler_params=cparams,
        )(x_p, params.w1_p, params.b1_p, params.w2_p, params.b2_p)
    else:
        hid_chunks = hid_p // th
        out_p = pl.pallas_call(
            _mlp_kernel_streamed,
            out_shape=jax.ShapeDtypeStruct((n_p, dim_p), dtype),
            grid_spec=pltpu.PrefetchScalarGridSpec(
                num_scalar_prefetch=0,
                grid=(n_tiles, hid_chunks),
                in_specs=[
                    pl.BlockSpec((tn, dim_p), lambda i, j: (i, 0)),
                    pl.BlockSpec((dim_p, th), lambda i, j: (0, j)),
                    pl.BlockSpec((1, th), lambda i, j: (0, j)),
                    pl.BlockSpec((th, dim_p), lambda i, j: (j, 0)),
                    pl.BlockSpec((1, dim_p), lambda i, j: (0, 0)),
                ],
                out_specs=pl.BlockSpec((tn, dim_p), lambda i, j: (i, 0)),
                scratch_shapes=[pltpu.VMEM((tn, dim_p), jnp.float32)],
            ),
            compiler_params=cparams,
        )(x_p, params.w1_p, params.b1_p, params.w2_p, params.b2_p)

    if n_p == N and dim_p == dim:
        return out_p
    return out_p[:N, :dim]


# ----------------------------------------------------------------------------- reference
def init_mlp_params(key, dim, hidden_dim, dtype=jnp.float32):
    """Deterministic init matching nn.Linear's uniform(-1/sqrt(fan_in), 1/sqrt(fan_in))."""
    k1, k2, k3, k4 = jax.random.split(key, 4)
    bound1 = 1.0 / jnp.sqrt(dim)
    bound2 = 1.0 / jnp.sqrt(hidden_dim)
    # stored as (in, out) so the kernel computes x @ W + b
    w1 = jax.random.uniform(k1, (dim, hidden_dim), dtype, -bound1, bound1)
    b1 = jax.random.uniform(k2, (hidden_dim,), dtype, -bound1, bound1)
    w2 = jax.random.uniform(k3, (hidden_dim, dim), dtype, -bound2, bound2)
    b2 = jax.random.uniform(k4, (dim,), dtype, -bound2, bound2)
    return w1, b1, w2, b2


def mlp_reference(x, w1, b1, w2, b2):
    h = x @ w1 + b1
    h = h * jax.nn.sigmoid(h)
    return h @ w2 + b2


if __name__ == "__main__":
    key = jax.random.PRNGKey(0)
    kx, kp = jax.random.split(key)

    # Test 1: demo shapes -> weight-resident plan (grid-invariant W1/W2, 2 row tiles).
    batch, seq, dim, hidden_dim = 2, 8, 32, 64
    x3 = jax.random.normal(kx, (batch, seq, dim), jnp.float32)
    w1, b1, w2, b2 = init_mlp_params(kp, dim, hidden_dim)
    params = prepare_mlp_params(w1, b1, w2, b2)      # padding hoisted out of the hot path

    x2 = x3.reshape(batch * seq, dim)                # Linear acts on the last axis
    out = mlp_pallas(x2, params).reshape(batch, seq, dim)
    jax.block_until_ready(out)
    ref = mlp_reference(x3, w1, b1, w2, b2)
    assert jnp.allclose(out, ref, atol=1e-4, rtol=1e-4), "mismatch vs reference (test 1)"

    # Test 2: forced streamed path (2 row tiles x 2 hidden chunks) to exercise the
    # accumulator init/finalize and streamed-weight BlockSpecs.
    dim2, hid2 = 32, 192
    x3b = jax.random.normal(jax.random.PRNGKey(1), (batch, seq, dim2), jnp.float32)
    p2 = init_mlp_params(jax.random.PRNGKey(2), dim2, hid2)
    params2 = prepare_mlp_params(*p2)
    out_b = mlp_pallas(x3b.reshape(-1, dim2), params2, tile_n=8, tile_h=128)
    out_b = out_b.reshape(batch, seq, dim2)
    jax.block_until_ready(out_b)
    ref_b = mlp_reference(x3b, *p2)
    assert jnp.allclose(out_b, ref_b, atol=1e-4, rtol=1e-4), "mismatch vs reference (test 2)"

    # Test 3: odd row count -> minimal row padding + output slice.
    n_odd = 13
    x_odd = jax.random.normal(jax.random.PRNGKey(3), (n_odd, dim), jnp.float32)
    out_c = mlp_pallas(x_odd, params)
    jax.block_until_ready(out_c)
    ref_c = mlp_reference(x_odd, w1, b1, w2, b2)
    assert jnp.allclose(out_c, ref_c, atol=1e-4, rtol=1e-4), "mismatch vs reference (test 3)"

    print("KERNEL_OK")
</pallas_src>

<mosaic_0001>
module attributes {stable_mosaic.version = 11 : i64} {
  func.func @_mlp_kernel_resident(%arg0: i32, %arg1: memref<8x128xf32, #tpu.memory_space<vmem>>, %arg2: memref<128x128xf32, #tpu.memory_space<vmem>>, %arg3: memref<1x128xf32, #tpu.memory_space<vmem>>, %arg4: memref<128x128xf32, #tpu.memory_space<vmem>>, %arg5: memref<1x128xf32, #tpu.memory_space<vmem>>, %arg6: memref<8x128xf32, #tpu.memory_space<vmem>>) attributes {dimension_semantics = [#tpu.dimension_semantics<parallel>], iteration_bounds = array<i64: 2>, scalar_prefetch = 0 : i64, scratch_operands = 0 : i64, tpu.core_type = #tpu.core_type<tc>, window_params = [{transform_indices = @transform_0, window_bounds = array<i64: 8, 128>}, {pipeline_mode = #tpu.pipeline_mode<synchronous>, transform_indices = @transform_1, window_bounds = array<i64: 128, 128>}, {pipeline_mode = #tpu.pipeline_mode<synchronous>, transform_indices = @transform_2, window_bounds = array<i64: 1, 128>}, {pipeline_mode = #tpu.pipeline_mode<synchronous>, transform_indices = @transform_3, window_bounds = array<i64: 128, 128>}, {pipeline_mode = #tpu.pipeline_mode<synchronous>, transform_indices = @transform_4, window_bounds = array<i64: 1, 128>}, {transform_indices = @transform_5, window_bounds = array<i64: 8, 128>}]} {
    %c0 = arith.constant 0 : index
    %c0_0 = arith.constant 0 : index
    %0 = vector.load %arg1[%c0, %c0_0] : memref<8x128xf32, #tpu.memory_space<vmem>>, vector<8x128xf32>
    %c0_1 = arith.constant 0 : index
    %c0_2 = arith.constant 0 : index
    %1 = vector.load %arg2[%c0_1, %c0_2] : memref<128x128xf32, #tpu.memory_space<vmem>>, vector<128x128xf32>
    %cst = arith.constant dense<0.000000e+00> : vector<8x128xf32>
    %2 = tpu.matmul %0, %1, %cst {dimension_numbers = #tpu.dot_dimension_numbers<[1], [0], [0], [1], [0, 0, 1, 1], [], []>} : vector<8x128xf32>, vector<128x128xf32>, vector<8x128xf32> -> vector<8x128xf32>
    %c0_3 = arith.constant 0 : index
    %c0_4 = arith.constant 0 : index
    %3 = vector.load %arg3[%c0_3, %c0_4] : memref<1x128xf32, #tpu.memory_space<vmem>>, vector<1x128xf32>
    %4 = vector.broadcast %3 : vector<1x128xf32> to vector<8x128xf32>
    %5 = arith.addf %2, %4 : vector<8x128xf32>
    %6 = arith.negf %5 : vector<8x128xf32>
    %7 = math.exp %6 : vector<8x128xf32>
    %cst_5 = arith.constant 1.000000e+00 : f32
    %8 = vector.broadcast %cst_5 : f32 to vector<8x128xf32>
    %9 = arith.addf %8, %7 : vector<8x128xf32>
    %10 = arith.divf %8, %9 : vector<8x128xf32>
    %11 = arith.mulf %5, %10 : vector<8x128xf32>
    %c0_6 = arith.constant 0 : index
    %c0_7 = arith.constant 0 : index
    %12 = vector.load %arg4[%c0_6, %c0_7] : memref<128x128xf32, #tpu.memory_space<vmem>>, vector<128x128xf32>
    %cst_8 = arith.constant dense<0.000000e+00> : vector<8x128xf32>
    %13 = tpu.matmul %11, %12, %cst_8 {dimension_numbers = #tpu.dot_dimension_numbers<[1], [0], [0], [1], [0, 0, 1, 1], [], []>} : vector<8x128xf32>, vector<128x128xf32>, vector<8x128xf32> -> vector<8x128xf32>
    %c0_9 = arith.constant 0 : index
    %c0_10 = arith.constant 0 : index
    %14 = vector.load %arg5[%c0_9, %c0_10] : memref<1x128xf32, #tpu.memory_space<vmem>>, vector<1x128xf32>
    %15 = vector.broadcast %14 : vector<1x128xf32> to vector<8x128xf32>
    %16 = arith.addf %13, %15 : vector<8x128xf32>
    %c0_11 = arith.constant 0 : index
    %c0_12 = arith.constant 0 : index
    %17 = vector.load %arg6[%c0_11, %c0_12] : memref<8x128xf32, #tpu.memory_space<vmem>>, vector<8x128xf32>
    tpu.vector_store %arg6[%c0_11, %c0_12], %16 {strides = array<i32>} : memref<8x128xf32, #tpu.memory_space<vmem>>, vector<8x128xf32>,
    return
  }
  func.func @transform_0(%arg0: i32) -> (i32, i32) {
    %c0_i32 = arith.constant 0 : i32
    %c0_i32_0 = arith.constant 0 : i32
    return %arg0, %c0_i32 : i32, i32
  }
  func.func @transform_1(%arg0: i32) -> (i32, i32) {
    %c0_i32 = arith.constant 0 : i32
    %c0_i32_0 = arith.constant 0 : i32
    %c0_i32_1 = arith.constant 0 : i32
    return %c0_i32, %c0_i32_0 : i32, i32
  }
  func.func @transform_2(%arg0: i32) -> (i32, i32) {
    %c0_i32 = arith.constant 0 : i32
    %c0_i32_0 = arith.constant 0 : i32
    %c0_i32_1 = arith.constant 0 : i32
    return %c0_i32, %c0_i32_0 : i32, i32
  }
  func.func @transform_3(%arg0: i32) -> (i32, i32) {
    %c0_i32 = arith.constant 0 : i32
    %c0_i32_0 = arith.constant 0 : i32
    %c0_i32_1 = arith.constant 0 : i32
    return %c0_i32, %c0_i32_0 : i32, i32
  }
  func.func @transform_4(%arg0: i32) -> (i32, i32) {
    %c0_i32 = arith.constant 0 : i32
    %c0_i32_0 = arith.constant 0 : i32
    %c0_i32_1 = arith.constant 0 : i32
    return %c0_i32, %c0_i32_0 : i32, i32
  }
  func.func @transform_5(%arg0: i32) -> (i32, i32) {
    %c0_i32 = arith.constant 0 : i32
    %c0_i32_0 = arith.constant 0 : i32
    return %arg0, %c0_i32 : i32, i32
  }
}

</mosaic_0001>

<bundles_post_ra>
// kernel: tpu_custom_call.1
= control target key start
LH: loop header
LB: loop body
LE: loop exit
PB: predicated region body
PF: predicated region fallthrough
CT: control target
= control target key end

     0   :  { %10 = vsyncpa [#allocation3], 0  ;;  %s1171_s0 = inlined_call_operand.hbm [shape: f32[16,128], index: 0, kind: input, shape index: {}]   ;;  %s1172_s1 = inlined_call_operand.hbm [shape: f32[128,128], index: 1, kind: input, shape index: {}]   ;;  %s1173_s2 = inlined_call_operand.vmem [shape: f32[1,128], index: 2, kind: input, shape index: {}]   ;;  %s1174_s3 = inlined_call_operand.hbm [shape: f32[128,128], index: 3, kind: input, shape index: {}]   ;;  %s1175_s4 = inlined_call_operand.vmem [shape: f32[1,128], index: 4, kind: input, shape index: {}]   ;;  %s1176_s5 = inlined_call_operand.hbm [shape: f32[16,128], index: 5, kind: output, shape index: {}]  }
   0x1   :  { %12 = vsyncpa [#allocation3 + $0x1], 0 }
   0x2   :  { %13 = vsyncpa [#allocation6], 0 }
   0x3   :  { %14 = vsyncpa [#allocation4], 0 }
   0x4   :  { %16 = vsyncpa [#allocation4 + $0x1], 0  ;;  %s953_s18 = smov 0   ;;  %s955_s19 = smov 0  }
   0x5   :  { %s957_s20 = smov 0   ;;  %s959_s21 = smov 0  }
   0x6 LB: > { %s974_s22 = sadd.s32 4294967295, %s913_s21   ;;  %s567_s23 = sadd.s32 4294967294, %s913_s21   ;;  %s913_s21 = sphi %s959_s21, %s1198_s21   ;;  %s909_s20 = sphi %s957_s20, %s1197_s20   ;;  %s905_s19 = sphi %s955_s19, %s1196_s19   ;;  %s901_s18 = sphi %s953_s18, %s1195_s18  }
   0x7   : > { %p42_p0 = scmp.ne.s32.totalorder %s905_s19, %s901_s18  ;;  %p1177_p1 = scmp.eq.s32.totalorder %s974_s22, 0 }
   0x8   : > { %p156_p3 = scmp.eq.s32.totalorder %s567_s23, 1  ;;  %p568_p5 = scmp.ge.s32.totalorder %s913_s21, 1 }
   0x9   : > { %p983_p4 = por %p1177_p1, %p42_p0  ;;  %p163_p7 = scmp.lt.s32.totalorder %s913_s21, 3 }
   0xa   : > { %p988_p6 = por %p156_p3, %p42_p0  ;;  %s915_s27 = smov [#allocation5]  }
   0xb   : > { %s1181_s24 = scalar_select %p983_p4, 1, 0 }
   0xc   : > { %s1182_s25 = scalar_select %p988_p6, 1, 0 }
   0xd   : > { %p993_p8 = pnand %p568_p5, %p163_p7  ;;  %s175_s28 = sshll.u32 %s915_s27, 4  ;;  %s176_s28 = int_to_ptr.vmem [resolvable:$true] %s175_s28 }
   0xe   : > { %s916_s30 = smov [#allocation7]   ;;  %s776_s7 = scalar_lea.vmem %s176_s28, 2048 }
   0xf   : > { %s1183_s26 = scalar_select %p993_p8, 1, 0 }
  0x10   : > { %p702_p9 = pneg %p993_p8  ;;  %s191_s6 = sshll.u32 %s916_s30, 4  ;;  %s192_s6 = int_to_ptr.vmem [resolvable:$true] %s191_s6 }
  0x11   : > { %p777_p13 = scmp.ne.s32.totalorder %s176_s28, %s776_s7  ;;  %p784_p5 = scmp.lt.s32.totalorder %s176_s28, %s176_s28 }
  0x12   : > { %p1002_p11 = pnand %p702_p9, %p1177_p1  ;;  %p785_p7 = scmp.lt.s32.totalorder %s776_s7, %s776_s7 }
  0x14   : > { %p767_p12 = pneg %p1002_p11  ;;  %p786_p10 = por %p785_p7, %p784_p5 }
  0x16   : > { %p779_p0 = pnand %p777_p13, %p767_p12 }
  0x18   : > { %p780_p3 = pneg %p779_p0 }
  0x1a   : > { %p787_p9 = pnand %p786_p10, %p780_p3 }
  0x1c   : > { %790 = shalt.err (!%p787_p9)
}
  0x1d   : > { %s917_s8 = smov 128   ;;  %s918_s9 = smov 8  }
  0x1e   : > { %705 = dma.hbm_to_vmem [thread:$0]  (!%p1002_p11), %s1172_s1, 2048, %s176_s28, [#allocation6], %s917_s8, %s917_s8, %s918_s9  }
  0x1f   : > { %s802_s12 = scalar_lea.vmem %s192_s6, 2048  ;;  %p810_p2 = scmp.lt.s32.totalorder %s192_s6, %s192_s6 }
  0x20   : > { %p803_p1 = scmp.ne.s32.totalorder %s192_s6, %s802_s12  ;;  %p811_p6 = scmp.lt.s32.totalorder %s802_s12, %s802_s12 }
  0x22   : > { %p805_p13 = pnand %p803_p1, %p767_p12  ;;  %p812_p5 = por %p811_p6, %p810_p2 }
  0x24   : > { %p806_p0 = pneg %p805_p13 }
  0x26   : > { %p813_p10 = pnand %p812_p5, %p806_p0 }
  0x28   : > { %816 = shalt.err (!%p813_p10)
}
  0x29   : > { %708 = dma.hbm_to_vmem [thread:$0]  (!%p1002_p11), %s1174_s3, 2048, %s192_s6, [#allocation6], %s917_s8, %s917_s8, %s918_s9  }
  0x2a   : > { %s1025_s15 = sadd.s32 1, %s913_s21   ;;  %s29_s16 = sadd.s32 1, %s909_s20 }
  0x2b   : > { %s26_s17 = ssub.s32 %s913_s21, %s1025_s15  ;;  %p36_p1 = scmp.ne.s32.totalorder %s909_s20, %s905_s19 }
  0x2c   : > { %p27_p2 = scmp.eq.s32.totalorder %s26_s17, 0  ;;  %p37_p6 = scmp.eq.s32.totalorder %s913_s21, 0 }
  0x2d   : > { %p1185_p12 = scmp.eq.s32.totalorder %s974_s22, 1  ;;  %p719_p7 = scmp.lt.s32.totalorder %s913_s21, 2 }
  0x2e   : > { %s1041_s27 = scalar_select %p27_p2, %s909_s20, %s29_s16  }
  0x2f   : > { %p1035_p3 = por %p1185_p12, %p36_p1  ;;  %p38_p9 = por %p37_p6, %p36_p1 }
  0x30   : > { %s208_s28 = sand.u32 1, %s909_s20   ;;  %s573_s30 = sshll.u32 %s913_s21, 7 }
  0x31   : > { %s1186_s23 = scalar_select %p1035_p3, 1, 0 }
  0x32   : > { %s572_s29 = sshll.u32 %s208_s28, 3  ;;  %s1048_s8 = scalar_lea.hbm %s1171_s0, %s573_s30 }
  0x33   : > { %s212_s9 = scalar_lea.vmem [#allocation2], %s572_s29  ;;  %p1050_p11 = pnand %p719_p7, %p38_p9 }
  0x34   : > { %s219_s10 = sshll.u32 %s212_s9, 4  ;;  %s209_s12 = scalar_lea.sflag [#allocation3], %s208_s28  ;;  %s220_s10 = int_to_ptr.vmem [resolvable:$true] %s219_s10 }
  0x35   : > { %s817_s13 = scalar_lea.hbm %s1048_s8, 128  ;;  %p819_p0 = pneg %p1050_p11 }
  0x36   : > { %p818_p13 = scmp.ne.s32.totalorder %s1048_s8, %s817_s13  ;;  %s822_s17 = scalar_lea.hbm %s1171_s0, 256 }
  0x37   : > { %p823_p1 = scmp.lt.s32.totalorder %s1048_s8, %s1171_s0  ;;  %p824_p2 = scmp.lt.s32.totalorder %s822_s17, %s817_s13 }
  0x38   : > { %p820_p5 = pnand %p819_p0, %p818_p13 }
  0x39   : > { %p825_p6 = por %p824_p2, %p823_p1 }
  0x3a   : > { %p821_p10 = pneg %p820_p5 }
  0x3c   : > { %p826_p12 = pnand %p825_p6, %p821_p10 }
  0x3e   : > { %829 = shalt.err (!%p826_p12)
}
  0x3f   : > { %s830_s6 = scalar_lea.vmem %s220_s10, 128  ;;  %s919_s28 = smov [#allocation2]  }
  0x40   : > { %p831_p7 = scmp.ne.s32.totalorder %s220_s10, %s830_s6  ;;  %s835_s7 = sshll.u32 %s919_s28, 4  ;;  %s836_s7 = int_to_ptr.vmem [resolvable:$false] %s835_s7 }
  0x41   : > { %s837_s9 = scalar_lea.vmem %s836_s7, 256  ;;  %p838_p13 = scmp.lt.s32.totalorder %s220_s10, %s836_s7 }
  0x42   : > { %p833_p9 = pnand %p831_p7, %p819_p0  ;;  %p839_p5 = scmp.lt.s32.totalorder %s837_s9, %s830_s6 }
  0x44   : > { %p834_p3 = pneg %p833_p9  ;;  %p840_p4 = por %p839_p5, %p838_p13 }
  0x46   : > { %p841_p8 = pnand %p840_p4, %p834_p3 }
  0x48   : > { %844 = shalt.err (!%p841_p8)
}
  0x49   : > { %712 = dma.hbm_to_vmem [thread:$0]  (!%p1050_p11), %s1048_s8, 128, %s220_s10, %s209_s12  }
  0x4a   : > { %p1188_p10 = scmp.ne.s32.totalorder %s1183_s26, 0 }
  0x4b   : > { %s1071_s13 = sand.u32 (!%p1188_p10), 1, %s905_s19   ;;  %p1189_p4 = scmp.ne.s32.totalorder (!%p1188_p10), %s1181_s24, 0 }
  0x4c   : > { %228 = sbr.rel (%p1188_p10) target bundleno = 556 (0x22c), region = 40  ;;  %s575_s14 = sshll.u32 (!%p1188_p10), %s1071_s13, 3 }
  0x4d   : > { %s231_s16 = scalar_lea.sflag (!%p1188_p10), [#allocation3], %s1071_s13  ;;  %s1077_s17 = scalar_lea.vmem (!%p1188_p10), [#allocation2], %s575_s14 }
  0x51   : > { %888 = dma.done.wait (%p1189_p4), %s231_s16, 128  }
  0x52   : > { %890 = vsyncadd (%p1189_p4), %s231_s16, 4294967168  ;;  %p1190_p8 = scmp.eq.s32.totalorder %s974_s22, 0 }
  0x54   : > { %892 = dma.done.wait (%p1190_p8), [#allocation6], 4096   ;;  %p1191_p3 = pmov %p1190_p8 }
  0x55   : > { %v920_v0 = vmov 0.0   ;;  %vm921_vm0 = vmmov 0   ;;  %v285_v1 = vld [vmem:[#allocation5 + $0x78] sm:$0xff]  ;;  %v284_v2 = vld [vmem:[#allocation5 + $0x70] sm:$0xff]  ;;  %v283_v3 = vld [vmem:[#allocation5 + $0x68] sm:$0xff]  ;;  %s583_s11 = sshll.u32 %s974_s22, 7 }
  0x56   : > { %894 = vsyncadd (%p1191_p3), [#allocation6], 4294963200  ;;  %620 = vmatprep.subr.mxu0 %v920_v0  ;;  %652 = vmatprep.mubr.msk.f32.mxu0 %vm921_vm0, %v920_v0  ;;  %v282_v4 = vld [vmem:[#allocation5 + $0x60] sm:$0xff]  ;;  %v281_v5 = vld [vmem:[#allocation5 + $0x58] sm:$0xff]  ;;  %s268_s12 = scalar_lea.vmem [#allocation8], %s575_s14  ;;  %s1134_s28 = scalar_lea.hbm %s1176_s5, %s583_s11 }
  0x57   : > { %655 = vmatprep.subr.mxu1 %v920_v0  ;;  %687 = vmatprep.mubr.msk.f32.mxu1 %vm921_vm0, %v920_v0  ;;  %v280_v6 = vld [vmem:[#allocation5 + $0x50] sm:$0xff]  ;;  %v279_v7 = vld [vmem:[#allocation5 + $0x48] sm:$0xff]  ;;  %v278_v8 = vld [vmem:[#allocation5 + $0x40] sm:$0xff]  ;;  %s478_s30 = sshll.u32 %s268_s12, 4  ;;  %s465_s7 = scalar_lea.sflag [#allocation4], %s1071_s13  ;;  %s479_s30 = int_to_ptr.vmem [resolvable:$true] %s478_s30 }
  0x58   : > { %621 = vmatpush3.msra.mxu0 %v285_v1  ;;  %v277_v9 = vld [vmem:[#allocation5 + $0x38] sm:$0xff]  ;;  %v276_v10 = vld [vmem:[#allocation5 + $0x30] sm:$0xff]  ;;  %v275_v11 = vld [vmem:[#allocation5 + $0x28] sm:$0xff]  ;;  %s845_s9 = scalar_lea.vmem %s479_s30, 128  ;;  %p1192_p0 = scmp.ne.s32.totalorder %s1186_s23, 0 }
  0x59   : > { %622 = vmatprep.subr.mxu0 %v920_v0  ;;  %v274_v12 = vld [vmem:[#allocation5 + $0x20] sm:$0xff]  ;;  %v273_v13 = vld [vmem:[#allocation5 + $0x18] sm:$0xff]  ;;  %v272_v14 = vld [vmem:[#allocation5 + $0x10] sm:$0xff]  ;;  %p846_p11 = scmp.ne.s32.totalorder %s479_s30, %s845_s9  ;;  %s922_s22 = smov [#allocation8]  }
  0x5a   : > { %623 = vmatpush3.msra.mxu0 %v284_v2  ;;  %v271_v15 = vld [vmem:[#allocation5 + $0x8] sm:$0xff]  ;;  %v270_v16 = vld [vmem:[#allocation5] sm:$0xff]  ;;  %v269_v17 = vld [vmem:[%s1077_s17] sm:$0xff]  ;;  %s849_s16 = sshll.u32 %s922_s22, 4  ;;  %s850_s16 = int_to_ptr.vmem [resolvable:$false] %s849_s16 }
  0x5b   : > { %624 = vmatprep.subr.mxu0 %v920_v0  ;;  %v385_v18 = vld [vmem:[#allocation7 + $0x78] sm:$0xff]  ;;  %v384_v19 = vld [vmem:[#allocation7 + $0x70] sm:$0xff]  ;;  %v383_v20 = vld [vmem:[#allocation7 + $0x68] sm:$0xff]  ;;  %p847_p1 = pnand %p846_p11, %p1192_p0  ;;  %s851_s14 = scalar_lea.vmem %s850_s16, 256 }
  0x5c   : > { %625 = vmatpush3.msra.mxu0 %v283_v3  ;;  %656 = vmatpush3.msra.mxu1 %v385_v18  ;;  %v382_v21 = vld [vmem:[#allocation7 + $0x60] sm:$0xff]  ;;  %v381_v22 = vld [vmem:[#allocation7 + $0x58] sm:$0xff]  ;;  %v380_v23 = vld [vmem:[#allocation7 + $0x50] sm:$0xff]  ;;  %p852_p6 = scmp.lt.s32.totalorder %s479_s30, %s850_s16  ;;  %p853_p12 = scmp.lt.s32.totalorder %s851_s14, %s845_s9 }
  0x5d   : > { %626 = vmatprep.subr.mxu0 %v920_v0  ;;  %657 = vmatprep.subr.mxu1 %v920_v0  ;;  %v379_v24 = vld [vmem:[#allocation7 + $0x48] sm:$0xff]  ;;  %v378_v25 = vld [vmem:[#allocation7 + $0x40] sm:$0xff]  ;;  %v377_v26 = vld [vmem:[#allocation7 + $0x38] sm:$0xff]  ;;  %p848_p2 = pneg %p847_p1 }
  0x5e   : > { %627 = vmatpush3.msra.mxu0 %v282_v4  ;;  %658 = vmatpush3.msra.mxu1 %v384_v19  ;;  %v376_v27 = vld [vmem:[#allocation7 + $0x30] sm:$0xff]  ;;  %v375_v28 = vld [vmem:[#allocation7 + $0x28] sm:$0xff]  ;;  %v374_v29 = vld [vmem:[#allocation7 + $0x20] sm:$0xff]  ;;  %p854_p7 = por %p853_p12, %p852_p6 }
  0x5f   : > { %628 = vmatprep.subr.mxu0 %v920_v0  ;;  %659 = vmatprep.subr.mxu1 %v920_v0  ;;  %v373_v30 = vld [vmem:[#allocation7 + $0x18] sm:$0xff]  ;;  %v372_v31 = vld [vmem:[#allocation7 + $0x10] sm:$0xff]  ;;  %v371_v32 = vld [vmem:[#allocation7 + $0x8] sm:$0xff] }
  0x60   : > { %629 = vmatpush3.msra.mxu0 %v281_v5  ;;  %660 = vmatpush3.msra.mxu1 %v383_v20  ;;  %v370_v33 = vld [vmem:[#allocation7] sm:$0xff]  ;;  %v579_v34 = vld [vmem:[%s1173_s2] ss:$0 sm:$0xff]  ;;  %p855_p9 = pnand %p854_p7, %p848_p2 }
  0x61   : > { %630 = vmatprep.subr.mxu0 %v920_v0  ;;  %661 = vmatprep.subr.mxu1 %v920_v0  ;;  %v581_v43 = vld [vmem:[%s1175_s4] ss:$0 sm:$0xff] }
  0x62   : > { %631 = vmatpush3.msra.mxu0 %v280_v6  ;;  %662 = vmatpush3.msra.mxu1 %v382_v21 }
  0x63   : > { %632 = vmatprep.subr.mxu0 %v920_v0  ;;  %663 = vmatprep.subr.mxu1 %v920_v0 }
  0x64   : > { %633 = vmatpush3.msra.mxu0 %v279_v7  ;;  %664 = vmatpush3.msra.mxu1 %v381_v22 }
  0x65   : > { %634 = vmatprep.subr.mxu0 %v920_v0  ;;  %665 = vmatprep.subr.mxu1 %v920_v0 }
  0x66   : > { %635 = vmatpush3.msra.mxu0 %v278_v8  ;;  %666 = vmatpush3.msra.mxu1 %v380_v23 }
  0x67   : > { %636 = vmatprep.subr.mxu0 %v920_v0  ;;  %667 = vmatprep.subr.mxu1 %v920_v0 }
  0x68   : > { %637 = vmatpush3.msra.mxu0 %v277_v9  ;;  %668 = vmatpush3.msra.mxu1 %v379_v24 }
  0x69   : > { %638 = vmatprep.subr.mxu0 %v920_v0  ;;  %669 = vmatprep.subr.mxu1 %v920_v0 }
  0x6a   : > { %639 = vmatpush3.msra.mxu0 %v276_v10  ;;  %670 = vmatpush3.msra.mxu1 %v378_v25 }
  0x6b   : > { %640 = vmatprep.subr.mxu0 %v920_v0  ;;  %671 = vmatprep.subr.mxu1 %v920_v0 }
  0x6c   : > { %641 = vmatpush3.msra.mxu0 %v275_v11  ;;  %672 = vmatpush3.msra.mxu1 %v377_v26 }
  0x6d   : > { %642 = vmatprep.subr.mxu0 %v920_v0  ;;  %673 = vmatprep.subr.mxu1 %v920_v0 }
  0x6e   : > { %643 = vmatpush3.msra.mxu0 %v274_v12  ;;  %674 = vmatpush3.msra.mxu1 %v376_v27 }
  0x6f   : > { %644 = vmatprep.subr.mxu0 %v920_v0  ;;  %675 = vmatprep.subr.mxu1 %v920_v0 }
  0x70   : > { %645 = vmatpush3.msra.mxu0 %v273_v13  ;;  %676 = vmatpush3.msra.mxu1 %v375_v28 }
  0x71   : > { %646 = vmatprep.subr.mxu0 %v920_v0  ;;  %677 = vmatprep.subr.mxu1 %v920_v0 }
  0x72   : > { %647 = vmatpush3.msra.mxu0 %v272_v14  ;;  %678 = vmatpush3.msra.mxu1 %v374_v29 }
  0x73   : > { %648 = vmatprep.subr.mxu0 %v920_v0  ;;  %679 = vmatprep.subr.mxu1 %v920_v0 }
  0x74   : > { %649 = vmatpush3.msra.mxu0 %v271_v15  ;;  %680 = vmatpush3.msra.mxu1 %v373_v30 }
  0x75   : > { %650 = vmatprep.subr.mxu0 %v920_v0  ;;  %681 = vmatprep.subr.mxu1 %v920_v0 }
  0x76   : > { %651 = vmatpush3.msra.mxu0 %v270_v16  ;;  %682 = vmatpush3.msra.mxu1 %v372_v31 }
  0x77   : > { %653 = vmatmul.mubr.f32.vlgmr.msra.gmra.mxu0 %v269_v17  ;;  %683 = vmatprep.subr.mxu1 %v920_v0 }
  0x78   : > { %684 = vmatpush3.msra.mxu1 %v371_v32 }
  0x79   : > { %685 = vmatprep.subr.mxu1 %v920_v0 }
  0x7a   : > { %686 = vmatpush3.msra.mxu1 %v370_v33 }
 0x137   : > { %v359_v35 = vpop.f32.mrf.mxu0 }
 0x138   : > { %v360_v36 = vadd.f32 %v579_v34, %v359_v35 }
 0x139   : > { %v654_v37 = vpop.f32.mrf.mxu0 }
 0x13a   : > { %v580_v38 = vmul.f32 -1.442695, %v360_v36 }
 0x13c   : > { %761 = vpow2.f32 %v580_v38 }
 0x149   : > { %v762_v39 = vpop.eup %761 }
 0x14a   : > { %v366_v40 = vadd.f32 1.0, %v762_v39 }
 0x14c   : > { %763 = vrcp.f32 %v366_v40 }
 0x159   : > { %v764_v41 = vpop.eup %763 }
 0x15a   : > { %v369_v42 = vmul.f32 %v764_v41, %v360_v36 }
 0x15c   : > { %688 = vmatmul.mubr.f32.vlgmr.msra.gmra.mxu1 %v369_v42 }
 0x21c   : > { %v459_v44 = vpop.f32.mrf.mxu1 }
 0x21d   : > { %v460_v45 = vadd.f32 %v581_v43, %v459_v44 }
 0x21e   : > { %v689_v46 = vpop.f32.mrf.mxu1 }
 0x21f   : > { %463 = vst [vmem:[%s268_s12] sm:$0xff] %v460_v45 }
 0x220   : > { %858 = shalt.err (!%p855_p9)
}
 0x221   : > { %s859_s17 = scalar_lea.hbm %s1134_s28, 128  ;;  %s863_s26 = scalar_lea.hbm %s1176_s5, 256 }
 0x222   : > { %p860_p13 = scmp.ne.s32.totalorder %s1134_s28, %s859_s17  ;;  %p864_p4 = scmp.lt.s32.totalorder %s1134_s28, %s1176_s5 }
 0x223   : > { %p865_p8 = scmp.lt.s32.totalorder %s863_s26, %s859_s17 }
 0x224   : > { %p861_p5 = pnand %p860_p13, %p1192_p0 }
 0x225   : > { %p866_p3 = por %p865_p8, %p864_p4 }
 0x226   : > { %p862_p10 = pneg %p861_p5 }
 0x228   : > { %p867_p11 = pnand %p866_p3, %p862_p10 }
 0x22a   : > { %870 = shalt.err (!%p867_p11)
}
 0x22b   : > { %700 = dma.vmem_to_hbm [thread:$0]  (%p1192_p0), %s479_s30, 128, %s1134_s28, %s465_s7  }
 0x22c PF: > { %s490_s11 = sand.u32 1, %s901_s18   ;;  %p1193_p1 = scmp.ne.s32.totalorder %s1182_s25, 0 }
 0x22d   : > { %p1194_p2 = scmp.ge.s32.totalorder %s913_s21, 2  ;;  %s491_s12 = scalar_lea.sflag [#allocation4], %s490_s11 }
 0x22f   : > { %p714_p6 = pnand %p1194_p2, %p1193_p1 }
 0x231   : > { %p715_p12 = pneg %p714_p6 }
 0x233   : > { %896 = dma.done.wait (%p715_p12), %s491_s12, 128  }
 0x234   : > { %898 = vsyncadd (%p715_p12), %s491_s12, 4294967168  ;;  %p19_p7 = scmp.ge.s32.totalorder %s1025_s15, 4   ;;  %s1195_s18 = smov %s905_s19 }
 0x235   : > { %s1196_s19 = smov %s909_s20  ;;  %s1197_s20 = smov %s1041_s27 }
 0x236   : > { %s1198_s21 = smov %s1025_s15  ;;  %21 = sbr.rel (!%p19_p7) target bundleno = 6 (0x6), region = 93 }
 0x23b   :  { %496 = vsyncpa [#allocation3], 1 }
 0x23c   :  { %498 = vsyncpa [#allocation3 + $0x1], 1 }
 0x23d   :  { %499 = vsyncpa [#allocation6], 1 }
 0x23e   :  { %500 = vsyncpa [#allocation4], 1 }
 0x23f   :  { %502 = vsyncpa [#allocation4 + $0x1], 1 }

</bundles_post_ra>
